<compile_context>
chip_gen: v7x
topology: tpu7x:2x2x1
jax: 0.10.0
libtpu: 0.0.40
codegen_flags: <defaults>
</compile_context>

<pallas_src>
import jax
import jax.numpy as jnp
from jax.experimental import pallas as pl
from jax.experimental.pallas import tpu as pltpu


# ----------------------------- kernels ---------------------------------------


def _masked_gumbel_softmax(tmpl, mask, g, inv_tau, out_dtype):
    """Shared in-VMEM math: softmax((template*mask + g) * inv_tau) along lanes."""
    logits = tmpl.astype(jnp.float32) * mask.astype(jnp.float32)  # (1,T) mask broadcasts
    z = (logits + g) * inv_tau
    z = z - jnp.max(z, axis=-1, keepdims=True)                    # numerically stable
    e = jnp.exp(z)
    r = 1.0 / jnp.sum(e, axis=-1, keepdims=True)                  # 1 divide/row
    return (e * r).astype(out_dtype)                              # 1 multiply/element


def _gumbel_softmax_prng_kernel(seed_ref, tau_ref, mask_ref, tmpl_ref, y_ref):
    """Fused path (real TPU only): Gumbel noise from the on-chip PRNG, no HBM noise."""
    # Seed with (seed, tile_id) so per-tile streams don't collide linearly across calls.
    pltpu.prng_seed(seed_ref[0], pl.program_id(0))
    bits = pltpu.prng_random_bits(tmpl_ref.shape)
    ubits = pltpu.bitcast(bits, jnp.uint32)
    # uniform [0,1): 23 random mantissa bits -> float in [1,2), subtract 1
    mant = jnp.bitwise_or(jnp.right_shift(ubits, jnp.uint32(9)),
                          jnp.uint32(0x3F800000))
    u = pltpu.bitcast(mant, jnp.float32) - 1.0
    g = -jnp.log(-jnp.log(u + 1e-10))        # u < 1 => inner -log > 0; no outer eps
    y_ref[...] = _masked_gumbel_softmax(
        tmpl_ref[...], mask_ref[...], g, 1.0 / tau_ref[0, 0], y_ref.dtype)


def _gumbel_softmax_noise_kernel(tau_ref, mask_ref, tmpl_ref, noise_ref, y_ref):
    """Portable path: precomputed Gumbel noise passed in (also used for verification)."""
    y_ref[...] = _masked_gumbel_softmax(
        tmpl_ref[...], mask_ref[...], noise_ref[...].astype(jnp.float32),
        1.0 / tau_ref[0, 0], y_ref.dtype)


# ----------------------------- wrapper ----------------------------------------


def _round_up(x, m):
    return ((x + m - 1) // m) * m


def _row_tile(b, t, block_rows):
    """8-aligned row tile; >=2 tiles for larger batches (v7x megacore); tile capped
    at ~2 MiB f32 so double-buffered streams fit scoped VMEM on all generations."""
    if b <= 8:
        return b                                             # tiny batch: one full tile
    cap = max(8, ((2 * 1024 * 1024) // (4 * t)) // 8 * 8)
    return max(8, min(block_rows, _round_up((b + 1) // 2, 8), cap))


def template_modifier_forward(template_mask, template, tau, seed=0, *,
                              block_rows=1024, gumbel_noise=None,
                              use_onchip_prng=None):
    """Pallas forward of TemplateModifier: gumbel_softmax(template * template_mask, tau).

    On a TPU backend (and when no explicit noise is given) the Gumbel noise is drawn
    by the on-chip PRNG inside the kernel (no HBM round trip). On other backends, or
    when `gumbel_noise` is supplied, the noise is an extra kernel input.
    """
    if template.ndim == 1:
        template = template[None, :]
    if template_mask.ndim == 1:
        template_mask = template_mask[None, :]
    b, t = template.shape
    mb = template_mask.shape[0]            # keep (1,T) masks un-broadcast: saves reads

    if use_onchip_prng is None:
        use_onchip_prng = (gumbel_noise is None) and (jax.default_backend() == "tpu")

    tb = _row_tile(b, t, block_rows)
    grid = (pl.cdiv(b, tb),)               # ragged last block handled by Pallas masking

    row_spec = pl.BlockSpec((tb, t), lambda i: (i, 0))
    mask_spec = row_spec if mb == b else pl.BlockSpec((mb, t), lambda i: (0, 0))
    tau_arr = jnp.full((1, 1), tau, dtype=jnp.float32)
    tau_spec = pl.BlockSpec((1, 1), lambda i: (0, 0))
    out_shape = jax.ShapeDtypeStruct((b, t), template.dtype)

    elems = b * t
    io_bytes = (template.size * template.dtype.itemsize
                + template_mask.size * template_mask.dtype.itemsize
                + elems * jnp.dtype(template.dtype).itemsize)
    compiler_params = pltpu.CompilerParams(
        dimension_semantics=("parallel",),          # shard batch loop over v7x TCs
        vmem_limit_bytes=32 * 1024 * 1024)

    if use_onchip_prng:
        seed_arr = jnp.asarray([seed], dtype=jnp.int32)
        seed_spec = pl.BlockSpec(memory_space=pltpu.MemorySpace.SMEM)
        return pl.pallas_call(
            _gumbel_softmax_prng_kernel,
            out_shape=out_shape,
            grid=grid,
            in_specs=[seed_spec, tau_spec, mask_spec, row_spec],
            out_specs=row_spec,
            compiler_params=compiler_params,
            cost_estimate=pl.CostEstimate(
                flops=12 * elems, transcendentals=3 * elems,
                bytes_accessed=io_bytes),
        )(seed_arr, tau_arr, template_mask, template)

    if gumbel_noise is None:
        gumbel_noise = jax.random.gumbel(
            jax.random.PRNGKey(seed), (b, t), dtype=jnp.float32)
    return pl.pallas_call(
        _gumbel_softmax_noise_kernel,
        out_shape=out_shape,
        grid=grid,
        in_specs=[tau_spec, mask_spec, row_spec, row_spec],
        out_specs=row_spec,
        compiler_params=compiler_params,
        cost_estimate=pl.CostEstimate(
            flops=9 * elems, transcendentals=1 * elems,
            bytes_accessed=io_bytes + elems * 4),
    )(tau_arr, template_mask, template, gumbel_noise)


def step_tau(tau, n_steps, min_tau=0.1, lambda_=2e-06):
    """Host-side tau annealing mirroring TemplateModifier.step() (scalar state, no kernel)."""
    return max(min_tau, tau - lambda_ * (1.0 - 1.0 / n_steps))


# TODO(synk): sample_template (per-row randperm over mask==1 indices) is a host-side,
# data-dependent gather utility, not part of the forward pass; left unimplemented.


# ----------------------------- demo / checks ----------------------------------


if __name__ == "__main__":
    batch, n_templates = 2, 128
    tau = 1.0          # initial value of self.tau
    seed = 0

    key = jax.random.PRNGKey(0)
    k_t, k_m, k_g = jax.random.split(key, 3)
    template = jax.random.normal(k_t, (batch, n_templates), jnp.float32)
    template_mask = (jax.random.uniform(k_m, (batch, n_templates)) > 0.5).astype(jnp.float32)
    template_mask = template_mask.at[:, 0].set(1.0)

    # 1) Module forward (fused on-chip Gumbel PRNG on TPU, jax.random noise elsewhere).
    y = template_modifier_forward(template_mask, template, tau, seed)
    y = jax.block_until_ready(y)
    assert y.shape == (batch, n_templates)
    assert bool(jnp.all(jnp.isfinite(y)))
    assert bool(jnp.allclose(jnp.sum(y, axis=-1), 1.0, atol=1e-5))
    assert bool(jnp.all(y >= 0.0))

    # 2) Exact check against a pure-JAX reference with shared, precomputed noise.
    g = jax.random.gumbel(k_g, (batch, n_templates), jnp.float32)
    y_kernel = template_modifier_forward(template_mask, template, tau, seed,
                                         gumbel_noise=g)
    y_kernel = jax.block_until_ready(y_kernel)
    y_ref = jax.nn.softmax((template * template_mask + g) / tau, axis=-1)
    assert bool(jnp.allclose(y_kernel, y_ref, atol=1e-5, rtol=1e-5))

    print("KERNEL_OK")
</pallas_src>

<mosaic_0001>
module attributes {stable_mosaic.version = 11 : i64} {
  func.func @_gumbel_softmax_noise_kernel(%arg0: i32, %arg1: memref<1x1xf32, #tpu.memory_space<vmem>>, %arg2: memref<2x128xf32, #tpu.memory_space<vmem>>, %arg3: memref<2x128xf32, #tpu.memory_space<vmem>>, %arg4: memref<2x128xf32, #tpu.memory_space<vmem>>, %arg5: memref<2x128xf32, #tpu.memory_space<vmem>>) attributes {dimension_semantics = [#tpu.dimension_semantics<parallel>], iteration_bounds = array<i64: 1>, scalar_prefetch = 0 : i64, scratch_operands = 0 : i64, tpu.core_type = #tpu.core_type<tc>, window_params = [{pipeline_mode = #tpu.pipeline_mode<synchronous>, transform_indices = @transform_0, window_bounds = array<i64: 1, 1>}, {transform_indices = @transform_1, window_bounds = array<i64: 2, 128>}, {transform_indices = @transform_2, window_bounds = array<i64: 2, 128>}, {transform_indices = @transform_3, window_bounds = array<i64: 2, 128>}, {transform_indices = @transform_4, window_bounds = array<i64: 2, 128>}]} {
    %c0 = arith.constant 0 : index
    %c0_0 = arith.constant 0 : index
    %0 = vector.load %arg3[%c0, %c0_0] : memref<2x128xf32, #tpu.memory_space<vmem>>, vector<2x128xf32>
    %c0_1 = arith.constant 0 : index
    %c0_2 = arith.constant 0 : index
    %1 = vector.load %arg2[%c0_1, %c0_2] : memref<2x128xf32, #tpu.memory_space<vmem>>, vector<2x128xf32>
    %c0_3 = arith.constant 0 : index
    %c0_4 = arith.constant 0 : index
    %2 = vector.load %arg4[%c0_3, %c0_4] : memref<2x128xf32, #tpu.memory_space<vmem>>, vector<2x128xf32>
    %c0_5 = arith.constant 0 : index
    %c0_6 = arith.constant 0 : index
    %3 = vector.load %arg1[%c0_5, %c0_6] : memref<1x1xf32, #tpu.memory_space<vmem>>, vector<1x1xf32>
    %4 = vector.extract %3[0, 0] : f32 from vector<1x1xf32>
    %cst = arith.constant 1.000000e+00 : f32
    %5 = arith.divf %cst, %4 : f32
    %6 = arith.mulf %0, %1 : vector<2x128xf32>
    %7 = arith.addf %6, %2 : vector<2x128xf32>
    %8 = vector.broadcast %5 : f32 to vector<2x128xf32>
    %9 = arith.mulf %7, %8 : vector<2x128xf32>
    %cst_7 = arith.constant dense<0xFF800000> : vector<2xf32>
    %10 = vector.multi_reduction <maximumf>, %9, %cst_7 [1] : vector<2x128xf32> to vector<2xf32>
    %11 = vector.shape_cast %10 : vector<2xf32> to vector<2x1xf32>
    %12 = vector.broadcast %11 : vector<2x1xf32> to vector<2x128xf32>
    %13 = arith.subf %9, %12 : vector<2x128xf32>
    %14 = math.exp %13 : vector<2x128xf32>
    %cst_8 = arith.constant dense<0.000000e+00> : vector<2xf32>
    %15 = vector.multi_reduction <add>, %14, %cst_8 [1] : vector<2x128xf32> to vector<2xf32>
    %16 = vector.shape_cast %15 : vector<2xf32> to vector<2x1xf32>
    %cst_9 = arith.constant 1.000000e+00 : f32
    %17 = vector.broadcast %cst_9 : f32 to vector<2x1xf32>
    %18 = arith.divf %17, %16 : vector<2x1xf32>
    %19 = vector.broadcast %18 : vector<2x1xf32> to vector<2x128xf32>
    %20 = arith.mulf %14, %19 : vector<2x128xf32>
    %c0_10 = arith.constant 0 : index
    %c0_11 = arith.constant 0 : index
    %21 = vector.load %arg5[%c0_10, %c0_11] : memref<2x128xf32, #tpu.memory_space<vmem>>, vector<2x128xf32>
    tpu.vector_store %arg5[%c0_10, %c0_11], %20 {strides = array<i32>} : memref<2x128xf32, #tpu.memory_space<vmem>>, vector<2x128xf32>,
    return
  }
  func.func @transform_0(%arg0: i32) -> (i32, i32) {
    %c0_i32 = arith.constant 0 : i32
    %c0_i32_0 = arith.constant 0 : i32
    %c0_i32_1 = arith.constant 0 : i32
    return %c0_i32, %c0_i32_0 : i32, i32
  }
  func.func @transform_1(%arg0: i32) -> (i32, i32) {
    %c0_i32 = arith.constant 0 : i32
    %c0_i32_0 = arith.constant 0 : i32
    return %arg0, %c0_i32 : i32, i32
  }
  func.func @transform_2(%arg0: i32) -> (i32, i32) {
    %c0_i32 = arith.constant 0 : i32
    %c0_i32_0 = arith.constant 0 : i32
    return %arg0, %c0_i32 : i32, i32
  }
  func.func @transform_3(%arg0: i32) -> (i32, i32) {
    %c0_i32 = arith.constant 0 : i32
    %c0_i32_0 = arith.constant 0 : i32
    return %arg0, %c0_i32 : i32, i32
  }
  func.func @transform_4(%arg0: i32) -> (i32, i32) {
    %c0_i32 = arith.constant 0 : i32
    %c0_i32_0 = arith.constant 0 : i32
    return %arg0, %c0_i32 : i32, i32
  }
}

</mosaic_0001>

<bundles_post_ra>
// kernel: tpu_custom_call.1
= control target key start
LH: loop header
LB: loop body
LE: loop exit
PB: predicated region body
PF: predicated region fallthrough
CT: control target
= control target key end

     0   :  { %s145_s0 = inlined_call_operand.<no memory space> [shape: f32[1,1], index: 0, kind: input, shape index: {}]   ;;  %s146_s1 = inlined_call_operand.vmem [shape: f32[2,128], index: 1, kind: input, shape index: {}]   ;;  %s147_s2 = inlined_call_operand.vmem [shape: f32[2,128], index: 2, kind: input, shape index: {}]   ;;  %s148_s3 = inlined_call_operand.vmem [shape: f32[2,128], index: 3, kind: input, shape index: {}]   ;;  %s149_s4 = inlined_call_operand.hbm [shape: f32[2,128], index: 4, kind: output, shape index: {}]  }
   0x1   :  { %v9_v0 = vstv %s145_s0 }
   0x2   :  { %10 = vst [vmem:[#allocation2] sm:$0x1] %v9_v0 }
   0x9   :  { %v23_v1 = vld [vmem:[#allocation2] sm:$0x1] }
   0xa   :  { %60 = vpush %v23_v1 }
   0xb   :  { %11 = vsyncpa [#allocation4], 0  ;;  %v20_v4 = vld [vmem:[%s147_s2] sm:$0x3]  ;;  %vm32_vm0 = vcmask 1041408  }
   0xc   :  { %v21_v5 = vld [vmem:[%s146_s1] sm:$0x3]  ;;  %s95_s1 = smov [#allocation3]  }
   0xd   :  { %v28_v6 = vmul.f32 %v21_v5, %v20_v4  ;;  %v22_v7 = vld [vmem:[%s148_s3] sm:$0x3]  ;;  %s52_s2 = sshll.u32 %s95_s1, 4  ;;  %s53_s2 = int_to_ptr.vmem [resolvable:$true] %s52_s2 }
   0xe   :  { %s71_s3 = scalar_lea.vmem %s53_s2, 32  ;;  %p76_p1 = scmp.lt.s32.totalorder %s53_s2, %s53_s2 }
   0xf   :  { %v29_v8 = vadd.f32 %v28_v6, %v22_v7  ;;  %p72_p0 = scmp.ne.s32.totalorder %s53_s2, %s71_s3  ;;  %p77_p2 = scmp.lt.s32.totalorder %s71_s3, %s71_s3 }
  0x11   :  { %p78_p3 = por %p77_p2, %p76_p1 }
  0x13   :  { %p79_p4 = pnand %p78_p3, %p72_p0 }
  0x3b   :  { %s61_s17 = spop %60 }
  0x3c   :  { %v25_v2 = vstv %s61_s17 }
  0x3d   :  { %65 = vrcp.f32 %v25_v2 }
  0x47   :  { %v66_v3 = vpop.eup %65 }
  0x48   :  { %62 = vpush %v66_v3 }
  0x79   :  { %s63_s23 = spop %62 }
  0x7a   :  { %v30_v9 = vstv %s63_s23 }
  0x7b   :  { %v31_v10 = vmul.f32 %v30_v9, %v29_v8 }
  0x7d   :  { %v33_v11 = vsel %vm32_vm0, %v31_v10, -inf }
  0x7e   :  { %34 = vmax.xlane.f32.xlu0 %v33_v11 }
 0x10b   :  { %v35_v12 = vpop.xlane.xlu0 %34 }
 0x10c   :  { %v36_v13 = vsub.f32 %v31_v10, %v35_v12 }
 0x10e   :  { %v37_v14 = vmul.f32 1.442695, %v36_v13 }
 0x110   :  { %67 = vpow2.f32 %v37_v14 }
 0x11a   :  { %v68_v15 = vpop.eup %67 }
 0x11b   :  { %v39_v16 = vsel %vm32_vm0, %v68_v15, 0.0 }
 0x11c   :  { %40 = vadd.xlane.f32.xlu0 %v39_v16 }
 0x1a9   :  { %v41_v17 = vpop.xlane.xlu0 %40 }
 0x1aa   :  { %69 = vrcp.f32 %v41_v17 }
 0x1b4   :  { %v70_v18 = vpop.eup %69 }
 0x1b5   :  { %v44_v19 = vmul.f32 %v70_v18, %v68_v15 }
 0x1b7   :  { %45 = vst [vmem:[#allocation3] sm:$0x3] %v44_v19 }
 0x1b8   :  { %82 = shalt.err (!%p79_p4)
}
 0x1b9   :  { %s83_s26 = scalar_lea.hbm %s149_s4, 32 }
 0x1ba   :  { %p84_p5 = scmp.ne.s32.totalorder %s149_s4, %s83_s26  ;;  %p87_p6 = scmp.lt.u32.totalorder %s83_s26, %s149_s4 }
 0x1bc   :  { %p89_p7 = pnand %p87_p6, %p84_p5 }
 0x1be   :  { %92 = shalt.err (!%p89_p7)
}
 0x1bf   :  { %55 = dma.vmem_to_hbm [thread:$0]  %s53_s2, 32, %s149_s4, [#allocation4]  }
 0x1c0   :  { %93 = dma.done.wait [#allocation4], 32  }
 0x1c1   :  { %94 = vsyncadd [#allocation4], 4294967264 }
 0x1c2   :  { %59 = vsyncpa [#allocation4], 1 }

</bundles_post_ra>
